<compile_context>
chip_gen: v6e
topology: v6e:2x2x1
jax: 0.10.0
libtpu: 0.0.40
codegen_flags: <defaults>
</compile_context>

<pallas_src>
import functools

import jax
import jax.numpy as jnp
from jax.experimental import pallas as pl
from jax.experimental.pallas import tpu as pltpu


def _round_up(v, m):
    return -(-v // m) * m


def _device_kind():
    try:
        return jax.devices()[0].device_kind.lower()
    except Exception:
        return ""


def _contract_granularity():
    # v6e/v7x MXUs are 2x256^2: a 128-deep contraction only half-fills them.
    # Keep 128 on v5e (4x128^2) and for tiny true dims (<=128).
    kind = _device_kind()
    return 256 if any(t in kind for t in ("v6", "v7", "trillium")) else 128


def _vmem_budget_bytes():
    cap = None
    try:
        cap = getattr(pltpu.get_tpu_info(), "vmem_capacity_bytes", None)
    except Exception:
        cap = None
    if not cap:
        # v7x has 64 MiB physical per TC; v5e/v6e have 128 MiB.
        cap = (64 if "v7" in _device_kind() else 128) * 1024 * 1024
    # ~75% of physical, capped: leaves headroom for compiler-internal scratch.
    return int(min(cap * 3 // 4, 100 * 1024 * 1024))


def _encoder_kernel(x_ref, wqkv_ref, wo_ref, b_ref, o_ref, *,
                    tb, seq, seq_valid, hp, key_tile, compute_dtype,
                    approx_recip):
    """One grid step handles `tb` batch elements (rows = tb*seq).

    x_ref    : (tb*seq, Din_p)      float32 (cast to compute dtype in-kernel)
    wqkv_ref : (Din_p, 3*hp)        compute dtype (softmax scale folded into Q)
    wo_ref   : (hp, Dout_p)         compute dtype
    b_ref    : (1, 3*hp + Dout_p)   float32  [bq*scale | bk | bv | bo]
    o_ref    : (tb*seq, Dout_p)     out dtype
    """
    rows = tb * seq
    f32 = jnp.float32
    cd = compute_dtype

    # Fused QKV projection: f32 HBM stream cast on the VPU (halves input HBM
    # traffic vs. a wrapper-side pad+cast pass); one wide MXU matmul, f32 acc.
    x = x_ref[...].astype(cd)
    qkv = jnp.dot(x, wqkv_ref[...], preferred_element_type=f32)
    qkv = qkv + b_ref[:, :3 * hp]

    # Lane-tile-aligned slices; reshape while still f32 (seq % 8 == 0 so the
    # sublane split is a free relayout), then cast for the MXU.
    q = qkv[:, 0 * hp:1 * hp].reshape(tb, seq, hp).astype(cd)
    k = qkv[:, 1 * hp:2 * hp].reshape(tb, seq, hp).astype(cd)
    v = qkv[:, 2 * hp:3 * hp].reshape(tb, seq, hp).astype(cd)

    # Additive bias masking padded key positions (generated only when needed).
    need_mask = seq_valid < seq
    if need_mask:
        key_ids = jax.lax.broadcasted_iota(jnp.int32, (1, 1, seq), 2)
        key_bias = jnp.where(key_ids < seq_valid,
                             jnp.float32(0.0), jnp.float32(-1e30))

    num_kt = seq // key_tile
    if num_kt == 1:
        # Small-S fast path: materialize the (tb, S, S) scores once.
        s = jnp.einsum("bqh,bkh->bqk", q, k, preferred_element_type=f32)
        if need_mask:
            s = s + key_bias
        m = jnp.max(s, axis=-1, keepdims=True)
        p = jnp.exp(s - m)
        l = jnp.sum(p, axis=-1, keepdims=True)
        acc = jnp.einsum("bqk,bkh->bqh", p.astype(cd), v,
                         preferred_element_type=f32)
    else:
        # Flash / online-softmax over key tiles: live score buffers are
        # O(S * key_tile) instead of O(S^2) f32 (needed to fit v7x's 64 MiB
        # VMEM at long sequence lengths).
        m = jnp.full((tb, seq, 1), -1e30, f32)
        l = jnp.zeros((tb, seq, 1), f32)
        acc = jnp.zeros((tb, seq, hp), f32)
        for t in range(num_kt):            # static unroll, lane-aligned tiles
            lo = t * key_tile
            k_t = k[:, lo:lo + key_tile, :]
            v_t = v[:, lo:lo + key_tile, :]
            s = jnp.einsum("bqh,bkh->bqk", q, k_t, preferred_element_type=f32)
            if need_mask:
                s = s + key_bias[:, :, lo:lo + key_tile]
            m_new = jnp.maximum(m, jnp.max(s, axis=-1, keepdims=True))
            alpha = jnp.exp(m - m_new)
            p = jnp.exp(s - m_new)
            l = alpha * l + jnp.sum(p, axis=-1, keepdims=True)
            acc = alpha * acc + jnp.einsum("bqk,bkh->bqh", p.astype(cd), v_t,
                                           preferred_element_type=f32)
            m = m_new

    # Deferred softmax normalization: single EUP reciprocal + one multiply.
    inv_l = pl.reciprocal(l, approx=approx_recip)
    attn = (acc * inv_l).reshape(rows, hp).astype(cd)

    out = jnp.dot(attn, wo_ref[...], preferred_element_type=f32)
    out = out + b_ref[:, 3 * hp:]
    o_ref[...] = out.astype(o_ref.dtype)      # lane-dense: Dout_p % 128 == 0


def transformer_encoder(x, params, *, compute_dtype=jnp.bfloat16,
                        out_dtype=None, block_b=None):
    """x: [B, S, input_dim] -> [B, S, output_dim] (out_dtype, default x.dtype)."""
    B, S, Din = x.shape
    wq, wk, wv, wo, bq, bk, bv, bo = params
    H = wq.shape[1]
    Dout = wo.shape[1]

    cd = jnp.dtype(compute_dtype)
    out_dt = jnp.dtype(out_dtype) if out_dtype is not None else x.dtype
    f32 = jnp.float32
    use_approx = cd != jnp.dtype(jnp.float32)

    LANE = 128
    kgran = _contract_granularity()

    def pad_contract(d):          # contraction dims: fill the MXU depth
        return _round_up(d, LANE if d <= LANE else kgran)

    dinp = pad_contract(Din)
    hp = pad_contract(H)
    doutp = _round_up(Dout, LANE)

    # Sequence padding: 256-wide key tiles for the flash path; small S only
    # needs sublane alignment (16 when the output store is a 2-byte dtype).
    seq_sub = 16 if out_dt.itemsize == 2 else 8
    if S <= 256:
        s_p = _round_up(S, seq_sub)
        key_tile = s_p
    else:
        key_tile = 256
        s_p = _round_up(S, key_tile)

    # ---- weights: fused, scale-folded, zero-padded (numerically exact) ----
    scale = 1.0 / float(H) ** 0.5

    def pad2(a, r, c):
        return jnp.pad(a, ((0, r - a.shape[0]), (0, c - a.shape[1])))

    wqkv = jnp.concatenate([pad2(wq * scale, dinp, hp),
                            pad2(wk, dinp, hp),
                            pad2(wv, dinp, hp)], axis=1).astype(cd)
    wo_p = pad2(wo, hp, doutp).astype(cd)
    b_all = jnp.concatenate([pad2(bq * scale, 1, hp), pad2(bk, 1, hp),
                             pad2(bv, 1, hp), pad2(bo, 1, doutp)],
                            axis=1).astype(f32)

    # ---- VMEM-budgeted row-block sizing ----
    budget = _vmem_budget_bytes()
    cd_b = cd.itemsize
    # Conservative: assume double-buffered weights when sizing row blocks.
    w_vmem = 2 * ((dinp * 3 * hp + hp * doutp) * cd_b + (3 * hp + doutp) * 4)
    per_row = (dinp * 4 * 2 + doutp * out_dt.itemsize * 2   # pipelined in/out
               + 3 * hp * 4 + 3 * hp * cd_b                 # qkv f32 + q/k/v
               + hp * 4 + hp * cd_b                         # acc + attn
               + 2 * key_tile * 4 + 32)                     # score tiles, m/l
    rows_cap = max(s_p, (budget - w_vmem) // per_row)

    target_rows = 1024      # amortize ~0.35us/step and feed the MXU M-dim
    tb_cap = max(1, rows_cap // s_p)
    tb_want = max(1, min(B, tb_cap, -(-target_rows // s_p)))
    if block_b is not None:
        tb_want = max(1, min(B, block_b))
    tb = max(d for d in range(1, tb_want + 1) if B % d == 0)
    b_pad = B
    if tb < tb_want and tb * s_p < 256 and B > tb_want:
        # Awkward (e.g. prime) B: pad the batch rather than degrade to tiny
        # grid steps; padded batches compute finite garbage and are sliced off.
        tb = tb_want
        b_pad = _round_up(B, tb)
    rows_blk = tb * s_p

    # ---- inputs: keep x in f32 (cast on the VPU in-kernel), pad if needed ----
    pads = ((0, b_pad - B), (0, s_p - S), (0, dinp - Din))
    x_p = x if all(p[1] == 0 for p in pads) else jnp.pad(x, pads)
    x_flat = x_p.reshape(b_pad * s_p, dinp)

    kernel = functools.partial(
        _encoder_kernel, tb=tb, seq=s_p, seq_valid=S, hp=hp,
        key_tile=key_tile, compute_dtype=cd, approx_recip=use_approx)

    def build_call(single_buffer_weights):
        w_kw = {}
        if single_buffer_weights:
            if not hasattr(pl, "Buffered"):
                raise NotImplementedError("pl.Buffered unavailable")
            # Grid-invariant operands (constant index_map): one VMEM copy is
            # enough; halves weight VMEM so row blocks can grow.
            w_kw["pipeline_mode"] = pl.Buffered(1)
        grid_spec = pltpu.PrefetchScalarGridSpec(
            num_scalar_prefetch=0,
            grid=(b_pad // tb,),
            in_specs=[
                pl.BlockSpec((rows_blk, dinp), lambda i: (i, 0)),        # x
                pl.BlockSpec((dinp, 3 * hp), lambda i: (0, 0), **w_kw),  # Wqkv
                pl.BlockSpec((hp, doutp), lambda i: (0, 0), **w_kw),     # Wo
                pl.BlockSpec((1, 3 * hp + doutp), lambda i: (0, 0), **w_kw),
            ],
            out_specs=pl.BlockSpec((rows_blk, doutp), lambda i: (i, 0)),
        )
        return pl.pallas_call(
            kernel,
            out_shape=jax.ShapeDtypeStruct((b_pad * s_p, doutp), out_dt),
            grid_spec=grid_spec,
            compiler_params=pltpu.CompilerParams(
                # Batch-block axis is parallel -> shards across v7x's 2 TCs.
                dimension_semantics=("parallel",),
                # Chip-derived scoped-VMEM budget (v7x ~48 MiB, v5e/v6e ~96).
                vmem_limit_bytes=budget,
            ),
        )

    try:
        out = jax.block_until_ready(build_call(True)(x_flat, wqkv, wo_p, b_all))
    except Exception:
        # Installed Pallas may not support pipeline_mode=Buffered(1); fall
        # back to default double-buffered weights (correctness identical).
        out = build_call(False)(x_flat, wqkv, wo_p, b_all)

    out = out.reshape(b_pad, s_p, doutp)[:B, :S, :Dout]
    return out


def init_params(key, input_dim, hidden_dim, output_dim):
    ks = jax.random.split(key, 8)
    sin = 1.0 / jnp.sqrt(jnp.float32(input_dim))
    sh = 1.0 / jnp.sqrt(jnp.float32(hidden_dim))
    wq = jax.random.uniform(ks[0], (input_dim, hidden_dim), jnp.float32, -sin, sin)
    wk = jax.random.uniform(ks[1], (input_dim, hidden_dim), jnp.float32, -sin, sin)
    wv = jax.random.uniform(ks[2], (input_dim, hidden_dim), jnp.float32, -sin, sin)
    wo = jax.random.uniform(ks[3], (hidden_dim, output_dim), jnp.float32, -sh, sh)
    bq = jax.random.uniform(ks[4], (1, hidden_dim), jnp.float32, -sin, sin)
    bk = jax.random.uniform(ks[5], (1, hidden_dim), jnp.float32, -sin, sin)
    bv = jax.random.uniform(ks[6], (1, hidden_dim), jnp.float32, -sin, sin)
    bo = jax.random.uniform(ks[7], (1, output_dim), jnp.float32, -sh, sh)
    return (wq, wk, wv, wo, bq, bk, bv, bo)


def reference(x, params, compute_dtype=jnp.float32):
    """Plain-JAX reference: matmul operands in `compute_dtype`, f32 accumulate."""
    wq, wk, wv, wo, bq, bk, bv, bo = params
    cd = jnp.dtype(compute_dtype)
    f32 = jnp.float32
    hi = jax.lax.Precision.HIGHEST
    xc = x.astype(cd)
    q = jnp.dot(xc, wq.astype(cd), preferred_element_type=f32, precision=hi) + bq
    k = jnp.dot(xc, wk.astype(cd), preferred_element_type=f32, precision=hi) + bk
    v = jnp.dot(xc, wv.astype(cd), preferred_element_type=f32, precision=hi) + bv
    scores = jnp.einsum("bsh,bth->bst", q.astype(cd), k.astype(cd),
                        preferred_element_type=f32, precision=hi)
    scores = scores / jnp.sqrt(jnp.float32(wq.shape[1]))
    p = jax.nn.softmax(scores, axis=-1)
    attn = jnp.einsum("bst,bth->bsh", p.astype(cd), v.astype(cd),
                      preferred_element_type=f32, precision=hi)
    return jnp.dot(attn.astype(cd), wo.astype(cd),
                   preferred_element_type=f32, precision=hi) + bo


if __name__ == "__main__":
    key = jax.random.PRNGKey(0)
    kx, kp, kx2, kp2 = jax.random.split(key, 4)

    # Small shapes consistent with the module (B=2, S=8, dims=32).
    B, S = 2, 8
    input_dim, hidden_dim, output_dim = 32, 32, 32
    x = jax.random.normal(kx, (B, S, input_dim), jnp.float32)
    params = init_params(kp, input_dim, hidden_dim, output_dim)

    # Fast path: bf16 MXU operands, f32 accumulation, approx EUP reciprocal.
    out = transformer_encoder(x, params, compute_dtype=jnp.bfloat16)
    out = jax.block_until_ready(out)
    assert out.shape == (B, S, output_dim)
    ref_bf = reference(x, params, compute_dtype=jnp.bfloat16)
    err_bf = float(jnp.max(jnp.abs(out - ref_bf)))
    assert jnp.allclose(out, ref_bf, atol=2e-2, rtol=2e-2), f"bf16 max err {err_bf}"

    # Validation path: full-precision f32 matmuls, exact reciprocal.
    out_f32 = transformer_encoder(x, params, compute_dtype=jnp.float32)
    out_f32 = jax.block_until_ready(out_f32)
    ref_f32 = reference(x, params, compute_dtype=jnp.float32)
    err_f32 = float(jnp.max(jnp.abs(out_f32 - ref_f32)))
    assert jnp.allclose(out_f32, ref_f32, atol=5e-3, rtol=5e-3), f"f32 max err {err_f32}"

    # Exercise the key-tiled online-softmax (flash) path + padded-key masking
    # (S > 256 and not a multiple of the 256-wide key tile).
    B2, S2, D2 = 2, 320, 64
    x2 = jax.random.normal(kx2, (B2, S2, D2), jnp.float32)
    params2 = init_params(kp2, D2, D2, D2)
    out2 = transformer_encoder(x2, params2, compute_dtype=jnp.float32)
    out2 = jax.block_until_ready(out2)
    ref2 = reference(x2, params2, compute_dtype=jnp.float32)
    err2 = float(jnp.max(jnp.abs(out2 - ref2)))
    assert jnp.allclose(out2, ref2, atol=5e-3, rtol=5e-3), f"flash f32 max err {err2}"

    print("KERNEL_OK")
</pallas_src>

<mosaic_0001>
module attributes {stable_mosaic.version = 11 : i64} {
  func.func @_encoder_kernel(%arg0: i32, %arg1: memref<16x128xf32, #tpu.memory_space<vmem>>, %arg2: memref<128x384xbf16, #tpu.memory_space<vmem>>, %arg3: memref<128x128xbf16, #tpu.memory_space<vmem>>, %arg4: memref<1x512xf32, #tpu.memory_space<vmem>>, %arg5: memref<16x128xf32, #tpu.memory_space<vmem>>) attributes {dimension_semantics = [#tpu.dimension_semantics<parallel>], iteration_bounds = array<i64: 1>, scalar_prefetch = 0 : i64, scratch_operands = 0 : i64, tpu.core_type = #tpu.core_type<tc>, window_params = [{transform_indices = @transform_0, window_bounds = array<i64: 16, 128>}, {pipeline_mode = #tpu.pipeline_mode<synchronous>, transform_indices = @transform_1, window_bounds = array<i64: 128, 384>}, {pipeline_mode = #tpu.pipeline_mode<synchronous>, transform_indices = @transform_2, window_bounds = array<i64: 128, 128>}, {pipeline_mode = #tpu.pipeline_mode<synchronous>, transform_indices = @transform_3, window_bounds = array<i64: 1, 512>}, {transform_indices = @transform_4, window_bounds = array<i64: 16, 128>}]} {
    %c0 = arith.constant 0 : index
    %c0_0 = arith.constant 0 : index
    %0 = vector.load %arg1[%c0, %c0_0] : memref<16x128xf32, #tpu.memory_space<vmem>>, vector<16x128xf32>
    %1 = arith.truncf %0 : vector<16x128xf32> to vector<16x128xbf16>
    %c0_1 = arith.constant 0 : index
    %c0_2 = arith.constant 0 : index
    %2 = vector.load %arg2[%c0_1, %c0_2] : memref<128x384xbf16, #tpu.memory_space<vmem>>, vector<128x384xbf16>
    %cst = arith.constant dense<0.000000e+00> : vector<16x384xf32>
    %3 = tpu.matmul %1, %2, %cst {dimension_numbers = #tpu.dot_dimension_numbers<[1], [0], [0], [1], [0, 0, 1, 1], [], []>} : vector<16x128xbf16>, vector<128x384xbf16>, vector<16x384xf32> -> vector<16x384xf32>
    %c0_3 = arith.constant 0 : index
    %c0_4 = arith.constant 0 : index
    %4 = vector.load %arg4[%c0_3, %c0_4] : memref<1x512xf32, #tpu.memory_space<vmem>>, vector<1x384xf32>
    %5 = vector.broadcast %4 : vector<1x384xf32> to vector<16x384xf32>
    %6 = arith.addf %3, %5 : vector<16x384xf32>
    %7 = vector.extract_strided_slice %6 {offsets = [0, 0], sizes = [16, 128], strides = [1, 1]} : vector<16x384xf32> to vector<16x128xf32>
    %8 = vector.shape_cast %7 : vector<16x128xf32> to vector<2x8x128xf32>
    %9 = arith.truncf %8 : vector<2x8x128xf32> to vector<2x8x128xbf16>
    %10 = vector.extract_strided_slice %6 {offsets = [0, 128], sizes = [16, 128], strides = [1, 1]} : vector<16x384xf32> to vector<16x128xf32>
    %11 = vector.shape_cast %10 : vector<16x128xf32> to vector<2x8x128xf32>
    %12 = arith.truncf %11 : vector<2x8x128xf32> to vector<2x8x128xbf16>
    %13 = vector.extract_strided_slice %6 {offsets = [0, 256], sizes = [16, 128], strides = [1, 1]} : vector<16x384xf32> to vector<16x128xf32>
    %14 = vector.shape_cast %13 : vector<16x128xf32> to vector<2x8x128xf32>
    %15 = arith.truncf %14 : vector<2x8x128xf32> to vector<2x8x128xbf16>
    "tpu.trace_start"() <{level = 10 : i32, message = "bqh,bkh->bqk"}> : () -> ()
    %cst_5 = arith.constant dense<0.000000e+00> : vector<2x8x8xf32>
    %16 = tpu.matmul %9, %12, %cst_5 {dimension_numbers = #tpu.dot_dimension_numbers<[2], [2], [1], [1], [0, 0, 0, 1, 1, 1], [0], [0]>} : vector<2x8x128xbf16>, vector<2x8x128xbf16>, vector<2x8x8xf32> -> vector<2x8x8xf32>
    "tpu.trace_stop"() : () -> ()
    %cst_6 = arith.constant dense<0xFF800000> : vector<2x8xf32>
    %17 = vector.multi_reduction <maximumf>, %16, %cst_6 [2] : vector<2x8x8xf32> to vector<2x8xf32>
    %18 = vector.shape_cast %17 : vector<2x8xf32> to vector<2x8x1xf32>
    %19 = vector.broadcast %18 : vector<2x8x1xf32> to vector<2x8x8xf32>
    %20 = arith.subf %16, %19 : vector<2x8x8xf32>
    %21 = math.exp %20 : vector<2x8x8xf32>
    %cst_7 = arith.constant dense<0.000000e+00> : vector<2x8xf32>
    %22 = vector.multi_reduction <add>, %21, %cst_7 [2] : vector<2x8x8xf32> to vector<2x8xf32>
    %23 = vector.shape_cast %22 : vector<2x8xf32> to vector<2x8x1xf32>
    %24 = arith.truncf %21 : vector<2x8x8xf32> to vector<2x8x8xbf16>
    "tpu.trace_start"() <{level = 10 : i32, message = "bqk,bkh->bqh"}> : () -> ()
    %cst_8 = arith.constant dense<0.000000e+00> : vector<2x8x128xf32>
    %25 = tpu.matmul %24, %15, %cst_8 {dimension_numbers = #tpu.dot_dimension_numbers<[2], [1], [1], [2], [0, 0, 0, 1, 1, 2], [0], [0]>} : vector<2x8x8xbf16>, vector<2x8x128xbf16>, vector<2x8x128xf32> -> vector<2x8x128xf32>
    "tpu.trace_stop"() : () -> ()
    %26 = tpu.reciprocal %23 {approx = true} : vector<2x8x1xf32> -> vector<2x8x1xf32>
    %27 = vector.broadcast %26 : vector<2x8x1xf32> to vector<2x8x128xf32>
    %28 = arith.mulf %25, %27 : vector<2x8x128xf32>
    %29 = vector.shape_cast %28 : vector<2x8x128xf32> to vector<16x128xf32>
    %30 = arith.truncf %29 : vector<16x128xf32> to vector<16x128xbf16>
    %c0_9 = arith.constant 0 : index
    %c0_10 = arith.constant 0 : index
    %31 = vector.load %arg3[%c0_9, %c0_10] : memref<128x128xbf16, #tpu.memory_space<vmem>>, vector<128x128xbf16>
    %cst_11 = arith.constant dense<0.000000e+00> : vector<16x128xf32>
    %32 = tpu.matmul %30, %31, %cst_11 {dimension_numbers = #tpu.dot_dimension_numbers<[1], [0], [0], [1], [0, 0, 1, 1], [], []>} : vector<16x128xbf16>, vector<128x128xbf16>, vector<16x128xf32> -> vector<16x128xf32>
    %c0_12 = arith.constant 0 : index
    %c384 = arith.constant 384 : index
    %33 = vector.load %arg4[%c0_12, %c384] : memref<1x512xf32, #tpu.memory_space<vmem>>, vector<1x128xf32>
    %34 = vector.broadcast %33 : vector<1x128xf32> to vector<16x128xf32>
    %35 = arith.addf %32, %34 : vector<16x128xf32>
    %c0_13 = arith.constant 0 : index
    %c0_14 = arith.constant 0 : index
    %36 = vector.load %arg5[%c0_13, %c0_14] : memref<16x128xf32, #tpu.memory_space<vmem>>, vector<16x128xf32>
    tpu.vector_store %arg5[%c0_13, %c0_14], %35 {strides = array<i32>} : memref<16x128xf32, #tpu.memory_space<vmem>>, vector<16x128xf32>,
    return
  }
  func.func @transform_0(%arg0: i32) -> (i32, i32) {
    %c0_i32 = arith.constant 0 : i32
    %c0_i32_0 = arith.constant 0 : i32
    return %arg0, %c0_i32 : i32, i32
  }
  func.func @transform_1(%arg0: i32) -> (i32, i32) {
    %c0_i32 = arith.constant 0 : i32
    %c0_i32_0 = arith.constant 0 : i32
    %c0_i32_1 = arith.constant 0 : i32
    return %c0_i32, %c0_i32_0 : i32, i32
  }
  func.func @transform_2(%arg0: i32) -> (i32, i32) {
    %c0_i32 = arith.constant 0 : i32
    %c0_i32_0 = arith.constant 0 : i32
    %c0_i32_1 = arith.constant 0 : i32
    return %c0_i32, %c0_i32_0 : i32, i32
  }
  func.func @transform_3(%arg0: i32) -> (i32, i32) {
    %c0_i32 = arith.constant 0 : i32
    %c0_i32_0 = arith.constant 0 : i32
    %c0_i32_1 = arith.constant 0 : i32
    return %c0_i32, %c0_i32_0 : i32, i32
  }
  func.func @transform_4(%arg0: i32) -> (i32, i32) {
    %c0_i32 = arith.constant 0 : i32
    %c0_i32_0 = arith.constant 0 : i32
    return %arg0, %c0_i32 : i32, i32
  }
}

module attributes {stable_mosaic.version = 11 : i64} {
  func.func @_encoder_kernel(%arg0: i32, %arg1: memref<16x128xf32, #tpu.memory_space<vmem>>, %arg2: memref<128x384xbf16, #tpu.memory_space<vmem>>, %arg3: memref<128x128xbf16, #tpu.memory_space<vmem>>, %arg4: memref<1x512xf32, #tpu.memory_space<vmem>>, %arg5: memref<16x128xf32, #tpu.memory_space<vmem>>) attributes {dimension_semantics = [#tpu.dimension_semantics<parallel>], iteration_bounds = array<i64: 1>, scalar_prefetch = 0 : i64, scratch_operands = 0 : i64, tpu.core_type = #tpu.core_type<tc>, window_params = [{transform_indices = @transform_0, window_bounds = array<i64: 16, 128>}, {pipeline_mode = #tpu.pipeline_mode<synchronous>, transform_indices = @transform_1, window_bounds = array<i64: 128, 384>}, {pipeline_mode = #tpu.pipeline_mode<synchronous>, transform_indices = @transform_2, window_bounds = array<i64: 128, 128>}, {pipeline_mode = #tpu.pipeline_mode<synchronous>, transform_indices = @transform_3, window_bounds = array<i64: 1, 512>}, {transform_indices = @transform_4, window_bounds = array<i64: 16, 128>}]} {
    %c0 = arith.constant 0 : index
    %c0_0 = arith.constant 0 : index
    %0 = vector.load %arg1[%c0, %c0_0] : memref<16x128xf32, #tpu.memory_space<vmem>>, vector<16x128xf32>
    %1 = arith.truncf %0 : vector<16x128xf32> to vector<16x128xbf16>
    %c0_1 = arith.constant 0 : index
    %c0_2 = arith.constant 0 : index
    %2 = vector.load %arg2[%c0_1, %c0_2] : memref<128x384xbf16, #tpu.memory_space<vmem>>, vector<128x384xbf16>
    %cst = arith.constant dense<0.000000e+00> : vector<16x384xf32>
    %3 = tpu.matmul %1, %2, %cst {dimension_numbers = #tpu.dot_dimension_numbers<[1], [0], [0], [1], [0, 0, 1, 1], [], []>} : vector<16x128xbf16>, vector<128x384xbf16>, vector<16x384xf32> -> vector<16x384xf32>
    %c0_3 = arith.constant 0 : index
    %c0_4 = arith.constant 0 : index
    %4 = vector.load %arg4[%c0_3, %c0_4] : memref<1x512xf32, #tpu.memory_space<vmem>>, vector<1x384xf32>
    %5 = vector.broadcast %4 : vector<1x384xf32> to vector<16x384xf32>
    %6 = arith.addf %3, %5 : vector<16x384xf32>
    %7 = vector.extract_strided_slice %6 {offsets = [0, 0], sizes = [16, 128], strides = [1, 1]} : vector<16x384xf32> to vector<16x128xf32>
    %8 = vector.shape_cast %7 : vector<16x128xf32> to vector<2x8x128xf32>
    %9 = arith.truncf %8 : vector<2x8x128xf32> to vector<2x8x128xbf16>
    %10 = vector.extract_strided_slice %6 {offsets = [0, 128], sizes = [16, 128], strides = [1, 1]} : vector<16x384xf32> to vector<16x128xf32>
    %11 = vector.shape_cast %10 : vector<16x128xf32> to vector<2x8x128xf32>
    %12 = arith.truncf %11 : vector<2x8x128xf32> to vector<2x8x128xbf16>
    %13 = vector.extract_strided_slice %6 {offsets = [0, 256], sizes = [16, 128], strides = [1, 1]} : vector<16x384xf32> to vector<16x128xf32>
    %14 = vector.shape_cast %13 : vector<16x128xf32> to vector<2x8x128xf32>
    %15 = arith.truncf %14 : vector<2x8x128xf32> to vector<2x8x128xbf16>
    "tpu.trace_start"() <{level = 10 : i32, message = "bqh,bkh->bqk"}> : () -> ()
    %cst_5 = arith.constant dense<0.000000e+00> : vector<2x8x8xf32>
    %16 = tpu.matmul %9, %12, %cst_5 {dimension_numbers = #tpu.dot_dimension_numbers<[2], [2], [1], [1], [0, 0, 0, 1, 1, 1], [0], [0]>} : vector<2x8x128xbf16>, vector<2x8x128xbf16>, vector<2x8x8xf32> -> vector<2x8x8xf32>
    "tpu.trace_stop"() : () -> ()
    %cst_6 = arith.constant dense<0xFF800000> : vector<2x8xf32>
    %17 = vector.multi_reduction <maximumf>, %16, %cst_6 [2] : vector<2x8x8xf32> to vector<2x8xf32>
    %18 = vector.shape_cast %17 : vector<2x8xf32> to vector<2x8x1xf32>
    %19 = vector.broadcast %18 : vector<2x8x1xf32> to vector<2x8x8xf32>
    %20 = arith.subf %16, %19 : vector<2x8x8xf32>
    %21 = math.exp %20 : vector<2x8x8xf32>
    %cst_7 = arith.constant dense<0.000000e+00> : vector<2x8xf32>
    %22 = vector.multi_reduction <add>, %21, %cst_7 [2] : vector<2x8x8xf32> to vector<2x8xf32>
    %23 = vector.shape_cast %22 : vector<2x8xf32> to vector<2x8x1xf32>
    %24 = arith.truncf %21 : vector<2x8x8xf32> to vector<2x8x8xbf16>
    "tpu.trace_start"() <{level = 10 : i32, message = "bqk,bkh->bqh"}> : () -> ()
    %cst_8 = arith.constant dense<0.000000e+00> : vector<2x8x128xf32>
    %25 = tpu.matmul %24, %15, %cst_8 {dimension_numbers = #tpu.dot_dimension_numbers<[2], [1], [1], [2], [0, 0, 0, 1, 1, 2], [0], [0]>} : vector<2x8x8xbf16>, vector<2x8x128xbf16>, vector<2x8x128xf32> -> vector<2x8x128xf32>
    "tpu.trace_stop"() : () -> ()
    %26 = tpu.reciprocal %23 {approx = true} : vector<2x8x1xf32> -> vector<2x8x1xf32>
    %27 = vector.broadcast %26 : vector<2x8x1xf32> to vector<2x8x128xf32>
    %28 = arith.mulf %25, %27 : vector<2x8x128xf32>
    %29 = vector.shape_cast %28 : vector<2x8x128xf32> to vector<16x128xf32>
    %30 = arith.truncf %29 : vector<16x128xf32> to vector<16x128xbf16>
    %c0_9 = arith.constant 0 : index
    %c0_10 = arith.constant 0 : index
    %31 = vector.load %arg3[%c0_9, %c0_10] : memref<128x128xbf16, #tpu.memory_space<vmem>>, vector<128x128xbf16>
    %cst_11 = arith.constant dense<0.000000e+00> : vector<16x128xf32>
    %32 = tpu.matmul %30, %31, %cst_11 {dimension_numbers = #tpu.dot_dimension_numbers<[1], [0], [0], [1], [0, 0, 1, 1], [], []>} : vector<16x128xbf16>, vector<128x128xbf16>, vector<16x128xf32> -> vector<16x128xf32>
    %c0_12 = arith.constant 0 : index
    %c384 = arith.constant 384 : index
    %33 = vector.load %arg4[%c0_12, %c384] : memref<1x512xf32, #tpu.memory_space<vmem>>, vector<1x128xf32>
    %34 = vector.broadcast %33 : vector<1x128xf32> to vector<16x128xf32>
    %35 = arith.addf %32, %34 : vector<16x128xf32>
    %c0_13 = arith.constant 0 : index
    %c0_14 = arith.constant 0 : index
    %36 = vector.load %arg5[%c0_13, %c0_14] : memref<16x128xf32, #tpu.memory_space<vmem>>, vector<16x128xf32>
    tpu.vector_store %arg5[%c0_13, %c0_14], %35 {strides = array<i32>} : memref<16x128xf32, #tpu.memory_space<vmem>>, vector<16x128xf32>,
    return
  }
  func.func @transform_0(%arg0: i32) -> (i32, i32) {
    %c0_i32 = arith.constant 0 : i32
    %c0_i32_0 = arith.constant 0 : i32
    return %arg0, %c0_i32 : i32, i32
  }
  func.func @transform_1(%arg0: i32) -> (i32, i32) {
    %c0_i32 = arith.constant 0 : i32
    %c0_i32_0 = arith.constant 0 : i32
    %c0_i32_1 = arith.constant 0 : i32
    return %c0_i32, %c0_i32_0 : i32, i32
  }
  func.func @transform_2(%arg0: i32) -> (i32, i32) {
    %c0_i32 = arith.constant 0 : i32
    %c0_i32_0 = arith.constant 0 : i32
    %c0_i32_1 = arith.constant 0 : i32
    return %c0_i32, %c0_i32_0 : i32, i32
  }
  func.func @transform_3(%arg0: i32) -> (i32, i32) {
    %c0_i32 = arith.constant 0 : i32
    %c0_i32_0 = arith.constant 0 : i32
    %c0_i32_1 = arith.constant 0 : i32
    return %c0_i32, %c0_i32_0 : i32, i32
  }
  func.func @transform_4(%arg0: i32) -> (i32, i32) {
    %c0_i32 = arith.constant 0 : i32
    %c0_i32_0 = arith.constant 0 : i32
    return %arg0, %c0_i32 : i32, i32
  }
}

</mosaic_0001>

<bundles_post_ra>
// kernel: tpu_custom_call.1
= control target key start
LH: loop header
LB: loop body
LE: loop exit
PB: predicated region body
PF: predicated region fallthrough
CT: control target
= control target key end

     0   :  { %9 = vsyncpa [#allocation3], 0  ;;  %s1033_s0 = inlined_call_operand.hbm [shape: f32[16,128], index: 0, kind: input, shape index: {}]   ;;  %s1034_s1 = inlined_call_operand.hbm [shape: bf16[128,384], index: 1, kind: input, shape index: {}]   ;;  %s1035_s2 = inlined_call_operand.hbm [shape: bf16[128,128], index: 2, kind: input, shape index: {}]   ;;  %s1036_s3 = inlined_call_operand.vmem [shape: f32[1,512], index: 3, kind: input, shape index: {}]   ;;  %s1037_s4 = inlined_call_operand.hbm [shape: f32[16,128], index: 4, kind: output, shape index: {}]  }
   0x1   :  { %10 = vsyncpa [#allocation6], 0 }
   0x2   :  { %11 = vsyncpa [#allocation4], 0  ;;  %s933_s15 = smov [#allocation5]  }
   0x3   :  { %s29_s16 = sshll.u32 %s933_s15, 4  ;;  %s30_s16 = int_to_ptr.vmem [resolvable:$true] %s29_s16 }
   0x4   :  { %s855_s17 = scalar_lea.vmem %s30_s16, 3072  ;;  %p860_p1 = scmp.lt.s32.totalorder %s30_s16, %s30_s16 }
   0x5   :  { %p856_p0 = scmp.ne.s32.totalorder %s30_s16, %s855_s17  ;;  %p861_p2 = scmp.lt.s32.totalorder %s855_s17, %s855_s17 }
   0x7   :  { %p862_p3 = por %p861_p2, %p860_p1 }
   0x9   :  { %p863_p4 = pnand %p862_p3, %p856_p0 }
   0xb   :  { %866 = shalt.err (!%p863_p4)
}
   0xc   :  { %s934_s18 = smov 192   ;;  %s935_s19 = smov 12  }
   0xd   :  { %35 = dma.hbm_to_vmem [thread:$0]  %s1034_s1, 3072, %s30_s16, [#allocation6], %s934_s18, %s934_s18, %s935_s19  }
   0xe   :  { %s936_s22 = smov [#allocation2]  }
   0xf   :  { %s17_s23 = sshll.u32 %s936_s22, 4  ;;  %s18_s23 = int_to_ptr.vmem [resolvable:$true] %s17_s23 }
  0x10   :  { %s875_s24 = scalar_lea.vmem %s18_s23, 256  ;;  %p880_p6 = scmp.lt.s32.totalorder %s18_s23, %s18_s23 }
  0x11   :  { %p876_p5 = scmp.ne.s32.totalorder %s18_s23, %s875_s24  ;;  %p881_p7 = scmp.lt.s32.totalorder %s875_s24, %s875_s24 }
  0x13   :  { %p882_p8 = por %p881_p7, %p880_p6 }
  0x15   :  { %p883_p9 = pnand %p882_p8, %p876_p5 }
  0x17   :  { %886 = shalt.err (!%p883_p9)
}
  0x18   :  { %s937_s25 = smov 128   ;;  %s938_s26 = smov 8  }
  0x19   :  { %23 = dma.hbm_to_vmem [thread:$0]  %s1033_s0, 256, %s18_s23, [#allocation3], %s937_s25, %s937_s25, %s938_s26  }
  0x1a   :  { %s939_s1 = smov [#allocation7]  }
  0x1b   :  { %s41_s29 = sshll.u32 %s939_s1, 4  ;;  %s42_s29 = int_to_ptr.vmem [resolvable:$true] %s41_s29 }
  0x1c   :  { %s895_s30 = scalar_lea.vmem %s42_s29, 1024  ;;  %p900_p11 = scmp.lt.s32.totalorder %s42_s29, %s42_s29 }
  0x1d   :  { %p896_p10 = scmp.ne.s32.totalorder %s42_s29, %s895_s30  ;;  %p901_p12 = scmp.lt.s32.totalorder %s895_s30, %s895_s30 }
  0x1f   :  { %p902_p13 = por %p901_p12, %p900_p11 }
  0x21   :  { %p903_p0 = pnand %p902_p13, %p896_p10 }
  0x23   :  { %906 = shalt.err (!%p903_p0)
}
  0x24   :  { %s940_s5 = smov 64   ;;  %s941_s6 = smov 4  }
  0x25   :  { %47 = dma.hbm_to_vmem [thread:$0]  %s1035_s2, 1024, %s42_s29, [#allocation6], %s940_s5, %s940_s5, %s941_s6  }
  0x26   :  { %927 = dma.done.wait [#allocation3], 256  }
  0x27   :  { %928 = vsyncadd [#allocation3], 4294967040 }
  0x28   :  { %929 = dma.done.wait [#allocation6], 4096  }
  0x29   :  { %930 = vsyncadd [#allocation6], 4294963200  ;;  %v942_v0 = vmov 0   ;;  %v943_v1 = vmov 0.0   ;;  %v799_v2 = vld [vmem:[#allocation5 + $0xac] ss:$12 sps:$4 sm:$0xff]   ;;  %v97_v29 = vlaneseq }
  0x2a   :  { %272 = vmatprep.mubr.bf16.mxu0 %v942_v0  ;;  %722 = vmatprep.subr.bf16.mxu1 %v943_v1  ;;  %v801_v3 = vld [vmem:[#allocation5 + $0xa8] ss:$12 sps:$4 sm:$0xff]   ;;  %v804_v5 = vld [vmem:[#allocation5 + $0x90] ss:$12 sps:$4 sm:$0xff]   ;;  %v807_v7 = vld [vmem:[#allocation5 + $0x78] ss:$12 sps:$4 sm:$0xff]  }
  0x2b   :  { %240 = vmatprep.subr.bf16.mxu0 %v799_v2  ;;  %v802_v4 = vld [vmem:[#allocation5 + $0x94] ss:$12 sps:$4 sm:$0xff]   ;;  %v805_v6 = vld [vmem:[#allocation5 + $0x7c] ss:$12 sps:$4 sm:$0xff]   ;;  %v808_v8 = vld [vmem:[#allocation5 + $0x64] ss:$12 sps:$4 sm:$0xff]  }
  0x2c   :  { %241 = vmatpush1.bf16.msra.mxu0 %v801_v3  ;;  %v810_v9 = vld [vmem:[#allocation5 + $0x60] ss:$12 sps:$4 sm:$0xff]   ;;  %v823_v11 = vld [vmem:[#allocation5 + $0xb0] ss:$12 sps:$4 sm:$0xff]   ;;  %v824_v12 = vld [vmem:[#allocation5 + $0x98] ss:$12 sps:$4 sm:$0xff]  }
  0x2d   :  { %242 = vmatprep.subr.bf16.mxu0 %v802_v4  ;;  %v811_v10 = vld [vmem:[#allocation5 + $0x4c] ss:$12 sps:$4 sm:$0xff]   ;;  %723 = vmatpush3.bf16.msra.mxu1 %v823_v11  ;;  %v813_v13 = vld [vmem:[#allocation5 + $0x48] ss:$12 sps:$4 sm:$0xff]   ;;  %v816_v16 = vld [vmem:[#allocation5 + $0x30] ss:$12 sps:$4 sm:$0xff]  }
  0x2e   :  { %724 = vmatprep.subr.bf16.mxu1 %v943_v1  ;;  %v814_v14 = vld [vmem:[#allocation5 + $0x34] ss:$12 sps:$4 sm:$0xff]   ;;  %v817_v17 = vld [vmem:[#allocation5 + $0x1c] ss:$12 sps:$4 sm:$0xff]   ;;  %v819_v19 = vld [vmem:[#allocation5 + $0x18] ss:$12 sps:$4 sm:$0xff]  }
  0x2f   :  { %v825_v15 = vld [vmem:[#allocation5 + $0x80] ss:$12 sps:$4 sm:$0xff]   ;;  %v826_v18 = vld [vmem:[#allocation5 + $0x68] ss:$12 sps:$4 sm:$0xff]   ;;  %v820_v20 = vld [vmem:[#allocation5 + $0x4] ss:$12 sps:$4 sm:$0xff]  }
  0x30   :  { %243 = vmatpush1.bf16.msra.mxu0 %v804_v5  ;;  %v827_v21 = vld [vmem:[#allocation5 + $0x50] ss:$12 sps:$4 sm:$0xff]   ;;  %v822_v22 = vld [vmem:[#allocation5] ss:$12 sps:$4 sm:$0xff]   ;;  %v828_v26 = vld [vmem:[#allocation5 + $0x38] ss:$12 sps:$4 sm:$0xff]  }
  0x31   :  { %244 = vmatprep.subr.bf16.mxu0 %v805_v6  ;;  %725 = vmatpush3.bf16.msra.mxu1 %v824_v12  ;;  %v60_v23 = vld [vmem:[#allocation2] sm:$0xff]  ;;  %v61_v24 = vld [vmem:[#allocation2 + $0x8] sm:$0xff]  ;;  %v829_v27 = vld [vmem:[#allocation5 + $0x20] ss:$12 sps:$4 sm:$0xff]   ;;  %vm944_vm0 = vmmov 0   ;;  %v98_v30 = vshrl.u32 %v97_v29, 7 }
  0x32   :  { %726 = vmatprep.subr.bf16.mxu1 %v943_v1  ;;  %v62_v25 = vpack.c.bf16 %v61_v24, %v60_v23  ;;  %v830_v28 = vld [vmem:[#allocation5 + $0x8] ss:$12 sps:$4 sm:$0xff]   ;;  %738 = vmatprep.mubr.msk.bf16.mxu1 %vm944_vm0, %v943_v1  ;;  %v95_v32 = vld [vmem:[%s1036_s3] sm:$0x7]  ;;  %vm434_vm1 = vcmask 1043456   ;;  %vm410_vm2 = vcmask 64512  }
  0x33   :  { %v103_v31 = vsub.s32 1, %v98_v30  ;;  %v99_v34 = vsub.s32 0, %v98_v30  ;;  %v107_v48 = vsub.s32 2, %v98_v30  ;;  %v835_v23 = vld [vmem:[#allocation7 + $0x18] sm:$0xff]   ;;  %v836_v24 = vld [vmem:[#allocation7 + $0x10] sm:$0xff]   ;;  %s945_s11 = smov [#allocation8]  }
  0x34   :  { %245 = vmatpush1.bf16.msra.mxu0 %v807_v7  ;;  %s648_s12 = sshll.u32 %s945_s11, 4  ;;  %s649_s12 = int_to_ptr.vmem [resolvable:$true] %s648_s12 }
  0x35   :  { %246 = vmatprep.subr.bf16.mxu0 %v808_v8  ;;  %727 = vmatpush3.bf16.msra.mxu1 %v825_v15  ;;  %v104_v33 = vrot.slane %v95_v32, %v103_v31  ;;  %v100_v38 = vrot.slane %v95_v32, %v99_v34  ;;  %v108_v49 = vrot.slane %v95_v32, %v107_v48  ;;  %s907_s13 = scalar_lea.vmem %s649_s12, 256  ;;  %p912_p2 = scmp.lt.s32.totalorder %s649_s12, %s649_s12 }
  0x36   :  { %728 = vmatprep.subr.bf16.mxu1 %v943_v1  ;;  %p908_p1 = scmp.ne.s32.totalorder %s649_s12, %s907_s13  ;;  %p913_p3 = scmp.lt.s32.totalorder %s907_s13, %s907_s13 }
  0x38   :  { %247 = vmatpush1.bf16.msra.mxu0 %v810_v9  ;;  %p914_p4 = por %p913_p3, %p912_p2 }
  0x39   :  { %248 = vmatprep.subr.bf16.mxu0 %v811_v10  ;;  %729 = vmatpush3.bf16.msra.mxu1 %v826_v18 }
  0x3a   :  { %730 = vmatprep.subr.bf16.mxu1 %v943_v1  ;;  %p915_p5 = pnand %p914_p4, %p908_p1 }
  0x3c   :  { %249 = vmatpush1.bf16.msra.mxu0 %v813_v13 }
  0x3d   :  { %250 = vmatprep.subr.bf16.mxu0 %v814_v14  ;;  %731 = vmatpush3.bf16.msra.mxu1 %v827_v21  ;;  %v833_v21 = vld [vmem:[#allocation7 + $0x28] sm:$0xff]  }
  0x3e   :  { %732 = vmatprep.subr.bf16.mxu1 %v943_v1 }
  0x40   :  { %251 = vmatpush1.bf16.msra.mxu0 %v816_v16 }
  0x41   :  { %252 = vmatprep.subr.bf16.mxu0 %v817_v17  ;;  %733 = vmatpush3.bf16.msra.mxu1 %v828_v26  ;;  %v838_v26 = vld [vmem:[#allocation7] sm:$0xff]  }
  0x42   :  { %734 = vmatprep.subr.bf16.mxu1 %v943_v1 }
  0x44   :  { %253 = vmatpush1.bf16.msra.mxu0 %v819_v19  ;;  %v831_v19 = vld [vmem:[#allocation7 + $0x38] sm:$0xff]  }
  0x45   :  { %254 = vmatprep.subr.bf16.mxu0 %v820_v20  ;;  %735 = vmatpush3.bf16.msra.mxu1 %v829_v27  ;;  %v832_v20 = vld [vmem:[#allocation7 + $0x30] sm:$0xff]  }
  0x46   :  { %736 = vmatprep.subr.bf16.mxu1 %v943_v1 }
  0x48   :  { %255 = vmatpush1.bf16.msra.mxu0 %v822_v22  ;;  %v834_v22 = vld [vmem:[#allocation7 + $0x20] sm:$0xff]  }
  0x49   :  { %766 = vmatprep.subr.bf16.mxu0 %v943_v1  ;;  %737 = vmatpush3.bf16.msra.mxu1 %v830_v28 }
  0x4a   :  { %742 = vmatprep.subr.bf16.mxu1 %v943_v1 }
  0x4b   :  { %273 = vmatmul.mubr.bf16.vlgmr.msra.gmra.mxu0 %v62_v25 }
  0x4c   :  { %782 = vmatprep.mubr.msk.bf16.mxu0 %vm944_vm0, %v943_v1  ;;  %739 = vmatmul.mubr.bf16.vlgmr.msra.gmra.mxu1 %v62_v25  ;;  %v837_v25 = vld [vmem:[#allocation7 + $0x8] sm:$0xff]  }
  0x4d   :  { %744 = vmatprep.mubr.msk.bf16.mxu1 %vm944_vm0, %v943_v1  ;;  %767 = vmatpush3.bf16.msra.mxu0 %v831_v19 }
  0x4e   :  { %768 = vmatprep.subr.bf16.mxu0 %v943_v1 }
  0x51   :  { %769 = vmatpush3.bf16.msra.mxu0 %v832_v20 }
  0x52   :  { %770 = vmatprep.subr.bf16.mxu0 %v943_v1 }
  0x55   :  { %771 = vmatpush3.bf16.msra.mxu0 %v833_v21 }
  0x56   :  { %772 = vmatprep.subr.bf16.mxu0 %v943_v1 }
  0x59   :  { %773 = vmatpush3.bf16.msra.mxu0 %v834_v22 }
  0x5a   :  { %774 = vmatprep.subr.bf16.mxu0 %v943_v1 }
  0x5d   :  { %775 = vmatpush3.bf16.msra.mxu0 %v835_v23 }
  0x5e   :  { %776 = vmatprep.subr.bf16.mxu0 %v943_v1 }
  0x61   :  { %777 = vmatpush3.bf16.msra.mxu0 %v836_v24 }
  0x62   :  { %778 = vmatprep.subr.bf16.mxu0 %v943_v1 }
  0x65   :  { %779 = vmatpush3.bf16.msra.mxu0 %v837_v25 }
  0x66   :  { %780 = vmatprep.subr.bf16.mxu0 %v943_v1 }
  0x69   :  { %781 = vmatpush3.bf16.msra.mxu0 %v838_v26 }
 0x10b   :  { %v274_v35 = vpop.f32.mrf.mxu0 }
 0x10c   :  { %v275_v42 = vadd.f32 %v274_v35, %v100_v38  ;;  %v317_v50 = vpop.f32.mrf.mxu1 }
 0x10d   :  { %v276_v36 = vpop.f32.mrf.mxu0  ;;  %v318_v51 = vadd.f32 %v317_v50, %v108_v49 }
 0x10e   :  { %v277_v37 = vadd.f32 %v276_v36, %v104_v33  ;;  %v324_v44 = vpack.c.bf16 %v275_v42, %v275_v42  ;;  %v740_v52 = vpop.f32.mrf.mxu1 }
 0x10f   :  { %v278_v39 = vpop.f32.mrf.mxu0  ;;  %v328_v53 = vpack.c.bf16 %v318_v51, %v318_v51 }
 0x110   :  { %v326_v40 = vpack.c.bf16 %v277_v37, %v277_v37  ;;  %v279_v46 = vadd.f32 %v278_v39, %v100_v38  ;;  %v320_v54 = vpop.f32.mrf.mxu1 }
 0x111   :  { %v280_v41 = vpop.f32.mrf.mxu0  ;;  %v436_v55 = vsel %vm434_vm1, %v328_v53, 0  ;;  %v321_v56 = vadd.f32 %v320_v54, %v108_v49 }
 0x112   :  { %743 = vmatpush3.bf16.xpose.msra.mxu1 %v326_v40  ;;  %v281_v43 = vadd.f32 %v280_v41, %v104_v33  ;;  %v325_v47 = vpack.c.bf16 %v279_v46, %v279_v46  ;;  %v741_v57 = vpop.f32.mrf.mxu1  ;;  %v687_v41 = vld [vmem:[%s1036_s3 + $0x3] ss:$0 sm:$0xff] }
 0x113   :  { %748 = vmatprep.subr.bf16.mxu1 %v943_v1  ;;  %v329_v58 = vpack.c.bf16 %v321_v56, %v321_v56 }
 0x114   :  { %v327_v45 = vpack.c.bf16 %v281_v43, %v281_v43 }
 0x115   :  { %v482_v59 = vsel %vm434_vm1, %v329_v58, 0 }
 0x119   :  { %745 = vmatmul.mubr.bf16.vlgmr.msra.gmra.mxu1 %v324_v44 }
 0x11a   :  { %749 = vmatpush3.bf16.xpose.msra.mxu1 %v327_v45  ;;  %750 = vmatprep.mubr.msk.bf16.mxu1 %vm944_vm0, %v943_v1 }
 0x11b   :  { %754 = vmatprep.subr.bf16.mxu1 %v943_v1 }
 0x121   :  { %751 = vmatmul.mubr.bf16.vlgmr.msra.gmra.mxu1 %v325_v47 }
 0x122   :  { %756 = vmatprep.mubr.msk.bf16.mxu1 %vm944_vm0, %v943_v1  ;;  %755 = vmatpush3.bf16.msra.mxu1 %v436_v55 }
 0x123   :  { %760 = vmatprep.subr.bf16.mxu1 %v943_v1 }
 0x1d9   :  { %v364_v60 = vpop.f32.mrf.mxu1 }
 0x1da   :  { %v411_v61 = vsel %vm410_vm2, %v364_v60, -inf }
 0x1db   :  { %412 = vmax.xlane.f32.xlu0 %v411_v61  ;;  %v746_v62 = vpop.f32.mrf.mxu1 }
 0x1dd   :  { %v367_v63 = vpop.f32.mrf.mxu1 }
 0x1df   :  { %v747_v0 = vpop.f32.mrf.mxu1 }
 0x1e1   :  { %v404_v2 = vpop.f32.mrf.mxu1 }
 0x1e2   :  { %v414_v3 = vsel %vm410_vm2, %v404_v2, -inf }
 0x1e3   :  { %415 = vmax.xlane.f32.xlu0 %v414_v3  ;;  %v752_v4 = vpop.f32.mrf.mxu1 }
 0x1e5   :  { %v407_v5 = vpop.f32.mrf.mxu1 }
 0x1e7   :  { %v753_v6 = vpop.f32.mrf.mxu1 }
 0x264   :  { %v413_v7 = vpop.xlane.xlu0 %412 }
 0x265   :  { %v417_v8 = vsub.f32 %v364_v60, %v413_v7 }
 0x267   :  { %v419_v9 = vmul.f32 1.442695, %v417_v8 }
 0x269   :  { %839 = vpow2.f32 %v419_v9 }
 0x26c   :  { %v416_v10 = vpop.xlane.xlu0 %415 }
 0x26d   :  { %v418_v11 = vsub.f32 %v404_v2, %v416_v10 }
 0x26f   :  { %v421_v12 = vmul.f32 1.442695, %v418_v11 }
 0x271   :  { %841 = vpow2.f32 %v421_v12 }
 0x276   :  { %v840_v13 = vpop.eup %839 }
 0x277   :  { %v423_v14 = vsel %vm410_vm2, %v840_v13, 0.0  ;;  %v429_v15 = vpack.c.bf16 %v840_v13, %v840_v13 }
 0x278   :  { %424 = vadd.xlane.f32.xlu1 %v423_v14 }
 0x279   :  { %757 = vmatmul.mubr.msk.bf16.vlgmr.msra.gmra.mxu1 %vm410_vm2, %v429_v15 }
 0x27a   :  { %761 = vmatpush3.bf16.msra.mxu1 %v482_v59  ;;  %762 = vmatprep.mubr.msk.bf16.mxu1 %vm944_vm0, %v943_v1 }
 0x27e   :  { %v842_v16 = vpop.eup %841 }
 0x27f   :  { %v426_v17 = vsel %vm410_vm2, %v842_v16, 0.0  ;;  %v430_v18 = vpack.c.bf16 %v842_v16, %v842_v16 }
 0x280   :  { %427 = vadd.xlane.f32.xlu1 %v426_v17 }
 0x281   :  { %763 = vmatmul.mubr.msk.bf16.vlgmr.msra.gmra.mxu1 %vm410_vm2, %v430_v18 }
 0x301   :  { %v425_v27 = vpop.xlane.xlu1 %424 }
 0x302   :  { %843 = vrcp.f32 %v425_v27 }
 0x309   :  { %v428_v28 = vpop.xlane.xlu1 %427 }
 0x30a   :  { %845 = vrcp.f32 %v428_v28 }
 0x30f   :  { %v844_v33 = vpop.eup %843 }
 0x317   :  { %v846_v34 = vpop.eup %845 }
 0x339   :  { %v472_v29 = vpop.f32.mrf.mxu1 }
 0x33a   :  { %v526_v36 = vmul.f32 %v844_v33, %v472_v29 }
 0x33b   :  { %v758_v30 = vpop.f32.mrf.mxu1 }
 0x33d   :  { %v475_v31 = vpop.f32.mrf.mxu1 }
 0x33f   :  { %v759_v32 = vpop.f32.mrf.mxu1 }
 0x341   :  { %v518_v35 = vpop.f32.mrf.mxu1 }
 0x342   :  { %v527_v37 = vmul.f32 %v846_v34, %v518_v35 }
 0x343   :  { %v764_v38 = vpop.f32.mrf.mxu1 }
 0x344   :  { %v528_v39 = vpack.c.bf16 %v527_v37, %v526_v36 }
 0x345   :  { %v521_v40 = vpop.f32.mrf.mxu1 }
 0x346   :  { %783 = vmatmul.mubr.bf16.vlgmr.msra.gmra.mxu0 %v528_v39 }
 0x347   :  { %v765_v1 = vpop.f32.mrf.mxu1 }
 0x406   :  { %v634_v42 = vpop.f32.mrf.mxu0 }
 0x407   :  { %v635_v43 = vadd.f32 %v687_v41, %v634_v42 }
 0x408   :  { %v784_v44 = vpop.f32.mrf.mxu0 }
 0x409   :  { %641 = vst [vmem:[#allocation8] sm:$0xff] %v635_v43 }
 0x40a   :  { %v637_v45 = vpop.f32.mrf.mxu0 }
 0x40b   :  { %v638_v46 = vadd.f32 %v687_v41, %v637_v45 }
 0x40c   :  { %v785_v47 = vpop.f32.mrf.mxu0 }
 0x40d   :  { %642 = vst [vmem:[#allocation8 + $0x8] sm:$0xff] %v638_v46 }
 0x40e   :  { %918 = shalt.err (!%p915_p5)
}
 0x40f   :  { %654 = dma.vmem_to_hbm [thread:$0]  %s649_s12, 256, %s1037_s4, [#allocation4], %s937_s25, %s937_s25, %s938_s26  }
 0x410   :  { %931 = dma.done.wait [#allocation4], 256  }
 0x411   :  { %932 = vsyncadd [#allocation4], 4294967040 }
 0x412   :  { %658 = vsyncpa [#allocation3], 1 }
 0x413   :  { %659 = vsyncpa [#allocation6], 1 }
 0x414   :  { %660 = vsyncpa [#allocation4], 1 }

// kernel: tpu_custom_call.1
= control target key start
LH: loop header
LB: loop body
LE: loop exit
PB: predicated region body
PF: predicated region fallthrough
CT: control target
= control target key end

     0   :  { %9 = vsyncpa [#allocation3], 0  ;;  %s1033_s0 = inlined_call_operand.hbm [shape: f32[16,128], index: 0, kind: input, shape index: {}]   ;;  %s1034_s1 = inlined_call_operand.hbm [shape: bf16[128,384], index: 1, kind: input, shape index: {}]   ;;  %s1035_s2 = inlined_call_operand.hbm [shape: bf16[128,128], index: 2, kind: input, shape index: {}]   ;;  %s1036_s3 = inlined_call_operand.vmem [shape: f32[1,512], index: 3, kind: input, shape index: {}]   ;;  %s1037_s4 = inlined_call_operand.hbm [shape: f32[16,128], index: 4, kind: output, shape index: {}]  }
   0x1   :  { %10 = vsyncpa [#allocation6], 0 }
   0x2   :  { %11 = vsyncpa [#allocation4], 0  ;;  %s933_s15 = smov [#allocation5]  }
   0x3   :  { %s29_s16 = sshll.u32 %s933_s15, 4  ;;  %s30_s16 = int_to_ptr.vmem [resolvable:$true] %s29_s16 }
   0x4   :  { %s855_s17 = scalar_lea.vmem %s30_s16, 3072  ;;  %p860_p1 = scmp.lt.s32.totalorder %s30_s16, %s30_s16 }
   0x5   :  { %p856_p0 = scmp.ne.s32.totalorder %s30_s16, %s855_s17  ;;  %p861_p2 = scmp.lt.s32.totalorder %s855_s17, %s855_s17 }
   0x7   :  { %p862_p3 = por %p861_p2, %p860_p1 }
   0x9   :  { %p863_p4 = pnand %p862_p3, %p856_p0 }
   0xb   :  { %866 = shalt.err (!%p863_p4)
}
   0xc   :  { %s934_s18 = smov 192   ;;  %s935_s19 = smov 12  }
   0xd   :  { %35 = dma.hbm_to_vmem [thread:$0]  %s1034_s1, 3072, %s30_s16, [#allocation6], %s934_s18, %s934_s18, %s935_s19  }
   0xe   :  { %s936_s22 = smov [#allocation2]  }
   0xf   :  { %s17_s23 = sshll.u32 %s936_s22, 4  ;;  %s18_s23 = int_to_ptr.vmem [resolvable:$true] %s17_s23 }
  0x10   :  { %s875_s24 = scalar_lea.vmem %s18_s23, 256  ;;  %p880_p6 = scmp.lt.s32.totalorder %s18_s23, %s18_s23 }
  0x11   :  { %p876_p5 = scmp.ne.s32.totalorder %s18_s23, %s875_s24  ;;  %p881_p7 = scmp.lt.s32.totalorder %s875_s24, %s875_s24 }
  0x13   :  { %p882_p8 = por %p881_p7, %p880_p6 }
  0x15   :  { %p883_p9 = pnand %p882_p8, %p876_p5 }
  0x17   :  { %886 = shalt.err (!%p883_p9)
}
  0x18   :  { %s937_s25 = smov 128   ;;  %s938_s26 = smov 8  }
  0x19   :  { %23 = dma.hbm_to_vmem [thread:$0]  %s1033_s0, 256, %s18_s23, [#allocation3], %s937_s25, %s937_s25, %s938_s26  }
  0x1a   :  { %s939_s1 = smov [#allocation7]  }
  0x1b   :  { %s41_s29 = sshll.u32 %s939_s1, 4  ;;  %s42_s29 = int_to_ptr.vmem [resolvable:$true] %s41_s29 }
  0x1c   :  { %s895_s30 = scalar_lea.vmem %s42_s29, 1024  ;;  %p900_p11 = scmp.lt.s32.totalorder %s42_s29, %s42_s29 }
  0x1d   :  { %p896_p10 = scmp.ne.s32.totalorder %s42_s29, %s895_s30  ;;  %p901_p12 = scmp.lt.s32.totalorder %s895_s30, %s895_s30 }
  0x1f   :  { %p902_p13 = por %p901_p12, %p900_p11 }
  0x21   :  { %p903_p0 = pnand %p902_p13, %p896_p10 }
  0x23   :  { %906 = shalt.err (!%p903_p0)
}
  0x24   :  { %s940_s5 = smov 64   ;;  %s941_s6 = smov 4  }
  0x25   :  { %47 = dma.hbm_to_vmem [thread:$0]  %s1035_s2, 1024, %s42_s29, [#allocation6], %s940_s5, %s940_s5, %s941_s6  }
  0x26   :  { %927 = dma.done.wait [#allocation3], 256  }
  0x27   :  { %928 = vsyncadd [#allocation3], 4294967040 }
  0x28   :  { %929 = dma.done.wait [#allocation6], 4096  }
  0x29   :  { %930 = vsyncadd [#allocation6], 4294963200  ;;  %v942_v0 = vmov 0   ;;  %v943_v1 = vmov 0.0   ;;  %v799_v2 = vld [vmem:[#allocation5 + $0xac] ss:$12 sps:$4 sm:$0xff]   ;;  %v97_v29 = vlaneseq }
  0x2a   :  { %272 = vmatprep.mubr.bf16.mxu0 %v942_v0  ;;  %722 = vmatprep.subr.bf16.mxu1 %v943_v1  ;;  %v801_v3 = vld [vmem:[#allocation5 + $0xa8] ss:$12 sps:$4 sm:$0xff]   ;;  %v804_v5 = vld [vmem:[#allocation5 + $0x90] ss:$12 sps:$4 sm:$0xff]   ;;  %v807_v7 = vld [vmem:[#allocation5 + $0x78] ss:$12 sps:$4 sm:$0xff]  }
  0x2b   :  { %240 = vmatprep.subr.bf16.mxu0 %v799_v2  ;;  %v802_v4 = vld [vmem:[#allocation5 + $0x94] ss:$12 sps:$4 sm:$0xff]   ;;  %v805_v6 = vld [vmem:[#allocation5 + $0x7c] ss:$12 sps:$4 sm:$0xff]   ;;  %v808_v8 = vld [vmem:[#allocation5 + $0x64] ss:$12 sps:$4 sm:$0xff]  }
  0x2c   :  { %241 = vmatpush1.bf16.msra.mxu0 %v801_v3  ;;  %v810_v9 = vld [vmem:[#allocation5 + $0x60] ss:$12 sps:$4 sm:$0xff]   ;;  %v823_v11 = vld [vmem:[#allocation5 + $0xb0] ss:$12 sps:$4 sm:$0xff]   ;;  %v824_v12 = vld [vmem:[#allocation5 + $0x98] ss:$12 sps:$4 sm:$0xff]  }
  0x2d   :  { %242 = vmatprep.subr.bf16.mxu0 %v802_v4  ;;  %v811_v10 = vld [vmem:[#allocation5 + $0x4c] ss:$12 sps:$4 sm:$0xff]   ;;  %723 = vmatpush3.bf16.msra.mxu1 %v823_v11  ;;  %v813_v13 = vld [vmem:[#allocation5 + $0x48] ss:$12 sps:$4 sm:$0xff]   ;;  %v816_v16 = vld [vmem:[#allocation5 + $0x30] ss:$12 sps:$4 sm:$0xff]  }
  0x2e   :  { %724 = vmatprep.subr.bf16.mxu1 %v943_v1  ;;  %v814_v14 = vld [vmem:[#allocation5 + $0x34] ss:$12 sps:$4 sm:$0xff]   ;;  %v817_v17 = vld [vmem:[#allocation5 + $0x1c] ss:$12 sps:$4 sm:$0xff]   ;;  %v819_v19 = vld [vmem:[#allocation5 + $0x18] ss:$12 sps:$4 sm:$0xff]  }
  0x2f   :  { %v825_v15 = vld [vmem:[#allocation5 + $0x80] ss:$12 sps:$4 sm:$0xff]   ;;  %v826_v18 = vld [vmem:[#allocation5 + $0x68] ss:$12 sps:$4 sm:$0xff]   ;;  %v820_v20 = vld [vmem:[#allocation5 + $0x4] ss:$12 sps:$4 sm:$0xff]  }
  0x30   :  { %243 = vmatpush1.bf16.msra.mxu0 %v804_v5  ;;  %v827_v21 = vld [vmem:[#allocation5 + $0x50] ss:$12 sps:$4 sm:$0xff]   ;;  %v822_v22 = vld [vmem:[#allocation5] ss:$12 sps:$4 sm:$0xff]   ;;  %v828_v26 = vld [vmem:[#allocation5 + $0x38] ss:$12 sps:$4 sm:$0xff]  }
  0x31   :  { %244 = vmatprep.subr.bf16.mxu0 %v805_v6  ;;  %725 = vmatpush3.bf16.msra.mxu1 %v824_v12  ;;  %v60_v23 = vld [vmem:[#allocation2] sm:$0xff]  ;;  %v61_v24 = vld [vmem:[#allocation2 + $0x8] sm:$0xff]  ;;  %v829_v27 = vld [vmem:[#allocation5 + $0x20] ss:$12 sps:$4 sm:$0xff]   ;;  %vm944_vm0 = vmmov 0   ;;  %v98_v30 = vshrl.u32 %v97_v29, 7 }
  0x32   :  { %726 = vmatprep.subr.bf16.mxu1 %v943_v1  ;;  %v62_v25 = vpack.c.bf16 %v61_v24, %v60_v23  ;;  %v830_v28 = vld [vmem:[#allocation5 + $0x8] ss:$12 sps:$4 sm:$0xff]   ;;  %738 = vmatprep.mubr.msk.bf16.mxu1 %vm944_vm0, %v943_v1  ;;  %v95_v32 = vld [vmem:[%s1036_s3] sm:$0x7]  ;;  %vm434_vm1 = vcmask 1043456   ;;  %vm410_vm2 = vcmask 64512  }
  0x33   :  { %v103_v31 = vsub.s32 1, %v98_v30  ;;  %v99_v34 = vsub.s32 0, %v98_v30  ;;  %v107_v48 = vsub.s32 2, %v98_v30  ;;  %v835_v23 = vld [vmem:[#allocation7 + $0x18] sm:$0xff]   ;;  %v836_v24 = vld [vmem:[#allocation7 + $0x10] sm:$0xff]   ;;  %s945_s11 = smov [#allocation8]  }
  0x34   :  { %245 = vmatpush1.bf16.msra.mxu0 %v807_v7  ;;  %s648_s12 = sshll.u32 %s945_s11, 4  ;;  %s649_s12 = int_to_ptr.vmem [resolvable:$true] %s648_s12 }
  0x35   :  { %246 = vmatprep.subr.bf16.mxu0 %v808_v8  ;;  %727 = vmatpush3.bf16.msra.mxu1 %v825_v15  ;;  %v104_v33 = vrot.slane %v95_v32, %v103_v31  ;;  %v100_v38 = vrot.slane %v95_v32, %v99_v34  ;;  %v108_v49 = vrot.slane %v95_v32, %v107_v48  ;;  %s907_s13 = scalar_lea.vmem %s649_s12, 256  ;;  %p912_p2 = scmp.lt.s32.totalorder %s649_s12, %s649_s12 }
  0x36   :  { %728 = vmatprep.subr.bf16.mxu1 %v943_v1  ;;  %p908_p1 = scmp.ne.s32.totalorder %s649_s12, %s907_s13  ;;  %p913_p3 = scmp.lt.s32.totalorder %s907_s13, %s907_s13 }
  0x38   :  { %247 = vmatpush1.bf16.msra.mxu0 %v810_v9  ;;  %p914_p4 = por %p913_p3, %p912_p2 }
  0x39   :  { %248 = vmatprep.subr.bf16.mxu0 %v811_v10  ;;  %729 = vmatpush3.bf16.msra.mxu1 %v826_v18 }
  0x3a   :  { %730 = vmatprep.subr.bf16.mxu1 %v943_v1  ;;  %p915_p5 = pnand %p914_p4, %p908_p1 }
  0x3c   :  { %249 = vmatpush1.bf16.msra.mxu0 %v813_v13 }
  0x3d   :  { %250 = vmatprep.subr.bf16.mxu0 %v814_v14  ;;  %731 = vmatpush3.bf16.msra.mxu1 %v827_v21  ;;  %v833_v21 = vld [vmem:[#allocation7 + $0x28] sm:$0xff]  }
  0x3e   :  { %732 = vmatprep.subr.bf16.mxu1 %v943_v1 }
  0x40   :  { %251 = vmatpush1.bf16.msra.mxu0 %v816_v16 }
  0x41   :  { %252 = vmatprep.subr.bf16.mxu0 %v817_v17  ;;  %733 = vmatpush3.bf16.msra.mxu1 %v828_v26  ;;  %v838_v26 = vld [vmem:[#allocation7] sm:$0xff]  }
  0x42   :  { %734 = vmatprep.subr.bf16.mxu1 %v943_v1 }
  0x44   :  { %253 = vmatpush1.bf16.msra.mxu0 %v819_v19  ;;  %v831_v19 = vld [vmem:[#allocation7 + $0x38] sm:$0xff]  }
  0x45   :  { %254 = vmatprep.subr.bf16.mxu0 %v820_v20  ;;  %735 = vmatpush3.bf16.msra.mxu1 %v829_v27  ;;  %v832_v20 = vld [vmem:[#allocation7 + $0x30] sm:$0xff]  }
  0x46   :  { %736 = vmatprep.subr.bf16.mxu1 %v943_v1 }
  0x48   :  { %255 = vmatpush1.bf16.msra.mxu0 %v822_v22  ;;  %v834_v22 = vld [vmem:[#allocation7 + $0x20] sm:$0xff]  }
  0x49   :  { %766 = vmatprep.subr.bf16.mxu0 %v943_v1  ;;  %737 = vmatpush3.bf16.msra.mxu1 %v830_v28 }
  0x4a   :  { %742 = vmatprep.subr.bf16.mxu1 %v943_v1 }
  0x4b   :  { %273 = vmatmul.mubr.bf16.vlgmr.msra.gmra.mxu0 %v62_v25 }
  0x4c   :  { %782 = vmatprep.mubr.msk.bf16.mxu0 %vm944_vm0, %v943_v1  ;;  %739 = vmatmul.mubr.bf16.vlgmr.msra.gmra.mxu1 %v62_v25  ;;  %v837_v25 = vld [vmem:[#allocation7 + $0x8] sm:$0xff]  }
  0x4d   :  { %744 = vmatprep.mubr.msk.bf16.mxu1 %vm944_vm0, %v943_v1  ;;  %767 = vmatpush3.bf16.msra.mxu0 %v831_v19 }
  0x4e   :  { %768 = vmatprep.subr.bf16.mxu0 %v943_v1 }
  0x51   :  { %769 = vmatpush3.bf16.msra.mxu0 %v832_v20 }
  0x52   :  { %770 = vmatprep.subr.bf16.mxu0 %v943_v1 }
  0x55   :  { %771 = vmatpush3.bf16.msra.mxu0 %v833_v21 }
  0x56   :  { %772 = vmatprep.subr.bf16.mxu0 %v943_v1 }
  0x59   :  { %773 = vmatpush3.bf16.msra.mxu0 %v834_v22 }
  0x5a   :  { %774 = vmatprep.subr.bf16.mxu0 %v943_v1 }
  0x5d   :  { %775 = vmatpush3.bf16.msra.mxu0 %v835_v23 }
  0x5e   :  { %776 = vmatprep.subr.bf16.mxu0 %v943_v1 }
  0x61   :  { %777 = vmatpush3.bf16.msra.mxu0 %v836_v24 }
  0x62   :  { %778 = vmatprep.subr.bf16.mxu0 %v943_v1 }
  0x65   :  { %779 = vmatpush3.bf16.msra.mxu0 %v837_v25 }
  0x66   :  { %780 = vmatprep.subr.bf16.mxu0 %v943_v1 }
  0x69   :  { %781 = vmatpush3.bf16.msra.mxu0 %v838_v26 }
 0x10b   :  { %v274_v35 = vpop.f32.mrf.mxu0 }
 0x10c   :  { %v275_v42 = vadd.f32 %v274_v35, %v100_v38  ;;  %v317_v50 = vpop.f32.mrf.mxu1 }
 0x10d   :  { %v276_v36 = vpop.f32.mrf.mxu0  ;;  %v318_v51 = vadd.f32 %v317_v50, %v108_v49 }
 0x10e   :  { %v277_v37 = vadd.f32 %v276_v36, %v104_v33  ;;  %v324_v44 = vpack.c.bf16 %v275_v42, %v275_v42  ;;  %v740_v52 = vpop.f32.mrf.mxu1 }
 0x10f   :  { %v278_v39 = vpop.f32.mrf.mxu0  ;;  %v328_v53 = vpack.c.bf16 %v318_v51, %v318_v51 }
 0x110   :  { %v326_v40 = vpack.c.bf16 %v277_v37, %v277_v37  ;;  %v279_v46 = vadd.f32 %v278_v39, %v100_v38  ;;  %v320_v54 = vpop.f32.mrf.mxu1 }
 0x111   :  { %v280_v41 = vpop.f32.mrf.mxu0  ;;  %v436_v55 = vsel %vm434_vm1, %v328_v53, 0  ;;  %v321_v56 = vadd.f32 %v320_v54, %v108_v49 }
 0x112   :  { %743 = vmatpush3.bf16.xpose.msra.mxu1 %v326_v40  ;;  %v281_v43 = vadd.f32 %v280_v41, %v104_v33  ;;  %v325_v47 = vpack.c.bf16 %v279_v46, %v279_v46  ;;  %v741_v57 = vpop.f32.mrf.mxu1  ;;  %v687_v41 = vld [vmem:[%s1036_s3 + $0x3] ss:$0 sm:$0xff] }
 0x113   :  { %748 = vmatprep.subr.bf16.mxu1 %v943_v1  ;;  %v329_v58 = vpack.c.bf16 %v321_v56, %v321_v56 }
 0x114   :  { %v327_v45 = vpack.c.bf16 %v281_v43, %v281_v43 }
 0x115   :  { %v482_v59 = vsel %vm434_vm1, %v329_v58, 0 }
 0x119   :  { %745 = vmatmul.mubr.bf16.vlgmr.msra.gmra.mxu1 %v324_v44 }
 0x11a   :  { %749 = vmatpush3.bf16.xpose.msra.mxu1 %v327_v45  ;;  %750 = vmatprep.mubr.msk.bf16.mxu1 %vm944_vm0, %v943_v1 }
 0x11b   :  { %754 = vmatprep.subr.bf16.mxu1 %v943_v1 }
 0x121   :  { %751 = vmatmul.mubr.bf16.vlgmr.msra.gmra.mxu1 %v325_v47 }
 0x122   :  { %756 = vmatprep.mubr.msk.bf16.mxu1 %vm944_vm0, %v943_v1  ;;  %755 = vmatpush3.bf16.msra.mxu1 %v436_v55 }
 0x123   :  { %760 = vmatprep.subr.bf16.mxu1 %v943_v1 }
 0x1d9   :  { %v364_v60 = vpop.f32.mrf.mxu1 }
 0x1da   :  { %v411_v61 = vsel %vm410_vm2, %v364_v60, -inf }
 0x1db   :  { %412 = vmax.xlane.f32.xlu0 %v411_v61  ;;  %v746_v62 = vpop.f32.mrf.mxu1 }
 0x1dd   :  { %v367_v63 = vpop.f32.mrf.mxu1 }
 0x1df   :  { %v747_v0 = vpop.f32.mrf.mxu1 }
 0x1e1   :  { %v404_v2 = vpop.f32.mrf.mxu1 }
 0x1e2   :  { %v414_v3 = vsel %vm410_vm2, %v404_v2, -inf }
 0x1e3   :  { %415 = vmax.xlane.f32.xlu0 %v414_v3  ;;  %v752_v4 = vpop.f32.mrf.mxu1 }
 0x1e5   :  { %v407_v5 = vpop.f32.mrf.mxu1 }
 0x1e7   :  { %v753_v6 = vpop.f32.mrf.mxu1 }
 0x264   :  { %v413_v7 = vpop.xlane.xlu0 %412 }
 0x265   :  { %v417_v8 = vsub.f32 %v364_v60, %v413_v7 }
 0x267   :  { %v419_v9 = vmul.f32 1.442695, %v417_v8 }
 0x269   :  { %839 = vpow2.f32 %v419_v9 }
 0x26c   :  { %v416_v10 = vpop.xlane.xlu0 %415 }
 0x26d   :  { %v418_v11 = vsub.f32 %v404_v2, %v416_v10 }
 0x26f   :  { %v421_v12 = vmul.f32 1.442695, %v418_v11 }
 0x271   :  { %841 = vpow2.f32 %v421_v12 }
 0x276   :  { %v840_v13 = vpop.eup %839 }
 0x277   :  { %v423_v14 = vsel %vm410_vm2, %v840_v13, 0.0  ;;  %v429_v15 = vpack.c.bf16 %v840_v13, %v840_v13 }
 0x278   :  { %424 = vadd.xlane.f32.xlu1 %v423_v14 }
 0x279   :  { %757 = vmatmul.mubr.msk.bf16.vlgmr.msra.gmra.mxu1 %vm410_vm2, %v429_v15 }
 0x27a   :  { %761 = vmatpush3.bf16.msra.mxu1 %v482_v59  ;;  %762 = vmatprep.mubr.msk.bf16.mxu1 %vm944_vm0, %v943_v1 }
 0x27e   :  { %v842_v16 = vpop.eup %841 }
 0x27f   :  { %v426_v17 = vsel %vm410_vm2, %v842_v16, 0.0  ;;  %v430_v18 = vpack.c.bf16 %v842_v16, %v842_v16 }
 0x280   :  { %427 = vadd.xlane.f32.xlu1 %v426_v17 }
 0x281   :  { %763 = vmatmul.mubr.msk.bf16.vlgmr.msra.gmra.mxu1 %vm410_vm2, %v430_v18 }
 0x301   :  { %v425_v27 = vpop.xlane.xlu1 %424 }
 0x302   :  { %843 = vrcp.f32 %v425_v27 }
 0x309   :  { %v428_v28 = vpop.xlane.xlu1 %427 }
 0x30a   :  { %845 = vrcp.f32 %v428_v28 }
 0x30f   :  { %v844_v33 = vpop.eup %843 }
 0x317   :  { %v846_v34 = vpop.eup %845 }
 0x339   :  { %v472_v29 = vpop.f32.mrf.mxu1 }
 0x33a   :  { %v526_v36 = vmul.f32 %v844_v33, %v472_v29 }
 0x33b   :  { %v758_v30 = vpop.f32.mrf.mxu1 }
 0x33d   :  { %v475_v31 = vpop.f32.mrf.mxu1 }
 0x33f   :  { %v759_v32 = vpop.f32.mrf.mxu1 }
 0x341   :  { %v518_v35 = vpop.f32.mrf.mxu1 }
 0x342   :  { %v527_v37 = vmul.f32 %v846_v34, %v518_v35 }
 0x343   :  { %v764_v38 = vpop.f32.mrf.mxu1 }
 0x344   :  { %v528_v39 = vpack.c.bf16 %v527_v37, %v526_v36 }
 0x345   :  { %v521_v40 = vpop.f32.mrf.mxu1 }
 0x346   :  { %783 = vmatmul.mubr.bf16.vlgmr.msra.gmra.mxu0 %v528_v39 }
 0x347   :  { %v765_v1 = vpop.f32.mrf.mxu1 }
 0x406   :  { %v634_v42 = vpop.f32.mrf.mxu0 }
 0x407   :  { %v635_v43 = vadd.f32 %v687_v41, %v634_v42 }
 0x408   :  { %v784_v44 = vpop.f32.mrf.mxu0 }
 0x409   :  { %641 = vst [vmem:[#allocation8] sm:$0xff] %v635_v43 }
 0x40a   :  { %v637_v45 = vpop.f32.mrf.mxu0 }
 0x40b   :  { %v638_v46 = vadd.f32 %v687_v41, %v637_v45 }
 0x40c   :  { %v785_v47 = vpop.f32.mrf.mxu0 }
 0x40d   :  { %642 = vst [vmem:[#allocation8 + $0x8] sm:$0xff] %v638_v46 }
 0x40e   :  { %918 = shalt.err (!%p915_p5)
}
 0x40f   :  { %654 = dma.vmem_to_hbm [thread:$0]  %s649_s12, 256, %s1037_s4, [#allocation4], %s937_s25, %s937_s25, %s938_s26  }
 0x410   :  { %931 = dma.done.wait [#allocation4], 256  }
 0x411   :  { %932 = vsyncadd [#allocation4], 4294967040 }
 0x412   :  { %658 = vsyncpa [#allocation3], 1 }
 0x413   :  { %659 = vsyncpa [#allocation6], 1 }
 0x414   :  { %660 = vsyncpa [#allocation4], 1 }

</bundles_post_ra>
